<compile_context>
chip_gen: v5e
topology: v5e:2x2
jax: 0.10.0
libtpu: 0.0.40
codegen_flags: <defaults>
</compile_context>

<pallas_src>
import functools

import jax
import jax.numpy as jnp
import numpy as np
from jax.experimental import pallas as pl
from jax.experimental.pallas import tpu as pltpu

_NEG_SLOPE = 0.2


def _round_up(x, m):
    return ((x + m - 1) // m) * m


def _make_disc_kernel(n_hidden):
    """Build a fused (Linear + LeakyReLU) x n_hidden + Linear(., 1) kernel.

    Ref order: x, (w_i, b_i) * n_hidden, w_out_t, b_out, o
      x:       (TM, pacdim)  bf16   -- streamed batch tile
      w_i:     bf16 weights (hidden dims padded to 128), VMEM-resident
      b_i:     (1, d_i)      f32    VMEM-resident
      w_out_t: (1, d_last)   bf16   VMEM-resident (output head, transposed)
      b_out:   (1, 1)        f32    SMEM scalar
      o:       (1, TM)       f32    lane-dense transposed head output
    """

    def kernel(*refs):
        x_ref = refs[0]
        w_out_t_ref = refs[1 + 2 * n_hidden]
        b_out_ref = refs[2 + 2 * n_hidden]
        o_ref = refs[3 + 2 * n_hidden]

        # Hidden layers: Linear + LeakyReLU(0.2). (Dropout == identity, eval.)
        h = x_ref[...]
        for l in range(n_hidden):
            w_ref = refs[1 + 2 * l]
            b_ref = refs[2 + 2 * l]
            h = jnp.dot(h if l == 0 else h.astype(jnp.bfloat16), w_ref[...],
                        preferred_element_type=jnp.float32)
            h = h + b_ref[...]
            h = jnp.where(h > 0, h, _NEG_SLOPE * h)   # f32 VPU math (v5e-safe)

        # Output head, emitted transposed so the batch maps to lanes:
        #   (1, d_last) contracted with (TM, d_last) over features -> (1, TM)
        o = jax.lax.dot_general(
            w_out_t_ref[...], h.astype(jnp.bfloat16),
            dimension_numbers=(((1,), (1,)), ((), ())),
            preferred_element_type=jnp.float32)
        o_ref[...] = o + b_out_ref[0, 0]

    return kernel


def discriminator_forward(x, params, pac):
    """JAX wrapper reproducing Discriminator.forward (eval-mode dropout).

    x:      (B, input_dim) with B % pac == 0
    params: dict from init_discriminator_params (hidden dims padded to 128):
            ws: list of (d_in, d_out) f32, bs: list of (1, d_out) f32,
            w_out_t: (1, d_last) f32, b_out: (1, 1) f32.
    returns (B // pac, 1) float32.
    """
    B, input_dim = x.shape
    assert B % pac == 0, "batch size must be divisible by pac"
    pacdim = input_dim * pac
    xp = x.reshape(-1, pacdim)                    # == input_.view(-1, pacdim)
    n_groups = xp.shape[0]

    ws = params["ws"]
    bs = params["bs"]
    n_hidden = len(ws)
    d_last = ws[-1].shape[1]

    # Batch tile: largest multiple of 128 up to 512 rows; pad the ragged tail
    # in the wrapper (cheap + keeps every block (8,128)-aligned).
    TM = min(512, _round_up(max(n_groups, 1), 128))
    n_pad = _round_up(n_groups, TM)
    n_tiles = n_pad // TM
    if n_pad != n_groups:
        xp = jnp.pad(xp, ((0, n_pad - n_groups), (0, 0)))

    # bf16 MXU operands: halves the HBM bytes streamed for x, weights tiny.
    xp = xp.astype(jnp.bfloat16)
    ws_bf16 = [w.astype(jnp.bfloat16) for w in ws]
    w_out_t = params["w_out_t"].astype(jnp.bfloat16)

    in_specs = [pl.BlockSpec((TM, pacdim), lambda i: (i, 0))]   # x: streamed
    args = [xp]
    for w, b in zip(ws_bf16, bs):
        d_in, d_out = w.shape
        in_specs.append(pl.BlockSpec((d_in, d_out), lambda i: (0, 0)))  # resident
        in_specs.append(pl.BlockSpec((1, d_out), lambda i: (0, 0)))     # resident
        args += [w, b]
    in_specs.append(pl.BlockSpec((1, d_last), lambda i: (0, 0)))        # w_out^T
    in_specs.append(pl.BlockSpec(memory_space=pltpu.MemorySpace.SMEM))  # b_out
    args += [w_out_t, params["b_out"]]

    out = pl.pallas_call(
        _make_disc_kernel(n_hidden),
        out_shape=jax.ShapeDtypeStruct((1, n_pad), jnp.float32),
        grid=(n_tiles,),
        in_specs=in_specs,
        out_specs=pl.BlockSpec((1, TM), lambda i: (0, i)),      # lane-dense row
        compiler_params=pltpu.CompilerParams(
            dimension_semantics=("parallel",)),
    )(*args)

    return out.reshape(-1)[:n_groups].reshape(n_groups, 1)


def init_discriminator_params(key, input_dim, discriminator_dim, pac):
    """Torch-style Linear init (U[-1/sqrt(fan_in), 1/sqrt(fan_in)]).

    Hidden dims are zero-padded to multiples of 128 so the kernel's matmuls
    run on full lane tiles; padded channels are exact zeros and do not change
    the result.  The output head is stored transposed (w_out_t: (1, d_last)).
    """
    pacdim = input_dim * pac
    dims = list(discriminator_dim)
    dims_p = [_round_up(d, 128) for d in dims]

    def _linear(k, fan_in, fan_out):
        kw, kb = jax.random.split(k)
        bound = 1.0 / float(np.sqrt(fan_in))
        w = jax.random.uniform(kw, (fan_in, fan_out), jnp.float32, -bound, bound)
        b = jax.random.uniform(kb, (1, fan_out), jnp.float32, -bound, bound)
        return w, b

    keys = jax.random.split(key, len(dims) + 1)
    ws, bs = [], []
    d_in, d_in_p = pacdim, pacdim
    for k, d, dp in zip(keys[:-1], dims, dims_p):
        w, b = _linear(k, d_in, d)
        wp = jnp.zeros((d_in_p, dp), jnp.float32).at[:d_in, :d].set(w)
        bp = jnp.zeros((1, dp), jnp.float32).at[:, :d].set(b)
        ws.append(wp)
        bs.append(bp)
        d_in, d_in_p = d, dp

    w_out, b_out = _linear(keys[-1], d_in, 1)
    w_out_t = jnp.zeros((1, d_in_p), jnp.float32).at[:, :d_in].set(w_out.T)

    return {"ws": ws, "bs": bs, "w_out_t": w_out_t, "b_out": b_out.reshape(1, 1)}


def reference_forward_f32(x, params, pac):
    """Plain-JAX float32 reference of the original module semantics."""
    B, input_dim = x.shape
    h = x.reshape(-1, input_dim * pac).astype(jnp.float32)
    for w, b in zip(params["ws"], params["bs"]):
        h = h @ w + b
        h = jnp.where(h > 0, h, _NEG_SLOPE * h)
    return h @ params["w_out_t"].T + params["b_out"]


def reference_forward_bf16(x, params, pac):
    """Plain-JAX reference mirroring the kernel's bf16-in / f32-accumulate math."""
    B, input_dim = x.shape
    h = x.reshape(-1, input_dim * pac).astype(jnp.bfloat16)
    for w, b in zip(params["ws"], params["bs"]):
        h = jnp.dot(h, w.astype(jnp.bfloat16),
                    preferred_element_type=jnp.float32) + b
        h = jnp.where(h > 0, h, _NEG_SLOPE * h)
        h = h.astype(jnp.bfloat16)
    return jnp.dot(h, params["w_out_t"].T.astype(jnp.bfloat16),
                   preferred_element_type=jnp.float32) + params["b_out"]


if __name__ == "__main__":
    input_dim = 16
    pac = 10
    discriminator_dim = (32, 32)

    key = jax.random.PRNGKey(0)
    key, kparams = jax.random.split(key)
    params = init_discriminator_params(kparams, input_dim, discriminator_dim, pac)

    fwd = jax.jit(functools.partial(discriminator_forward, pac=pac))

    # Small batch (single grid tile, ragged tail padded inside the wrapper).
    key, kx = jax.random.split(key)
    batch = 40                                  # pac=10 -> 4 pac-groups
    x_small = jax.random.normal(kx, (batch, input_dim), jnp.float32)
    out = jax.block_until_ready(fwd(x_small, params))
    assert out.shape == (batch // pac, 1), out.shape
    ref_mirror = reference_forward_bf16(x_small, params, pac)
    assert jnp.allclose(out, ref_mirror, atol=2e-3, rtol=2e-3), \
        "mismatch vs bf16-mirrored reference"
    ref_full = reference_forward_f32(x_small, params, pac)
    assert jnp.allclose(out, ref_full, atol=5e-2, rtol=5e-2), \
        "mismatch vs f32 reference"

    # Larger batch exercising the multi-tile grid + tail-padding path.
    key, kx2 = jax.random.split(key)
    batch2 = 6400                               # 640 pac-groups -> 2 tiles of 512
    x_big = jax.random.normal(kx2, (batch2, input_dim), jnp.float32)
    out2 = jax.block_until_ready(fwd(x_big, params))
    assert out2.shape == (batch2 // pac, 1), out2.shape
    ref2 = reference_forward_bf16(x_big, params, pac)
    assert jnp.allclose(out2, ref2, atol=2e-3, rtol=2e-3), \
        "mismatch vs bf16-mirrored reference (tiled)"

    print("KERNEL_OK")
</pallas_src>

<mosaic_0001>
module attributes {stable_mosaic.version = 11 : i64} {
  func.func @kernel(%arg0: i32, %arg1: memref<128x160xbf16, #tpu.memory_space<vmem>>, %arg2: memref<160x128xbf16, #tpu.memory_space<vmem>>, %arg3: memref<1x128xf32, #tpu.memory_space<vmem>>, %arg4: memref<128x128xbf16, #tpu.memory_space<vmem>>, %arg5: memref<1x128xf32, #tpu.memory_space<vmem>>, %arg6: memref<1x128xbf16, #tpu.memory_space<vmem>>, %arg7: memref<1x1xf32, #tpu.memory_space<smem>>, %arg8: memref<1x128xf32, #tpu.memory_space<vmem>>) attributes {dimension_semantics = [#tpu.dimension_semantics<parallel>], iteration_bounds = array<i64: 1>, scalar_prefetch = 0 : i64, scratch_operands = 0 : i64, tpu.core_type = #tpu.core_type<tc>, window_params = [{transform_indices = @transform_0, window_bounds = array<i64: 128, 160>}, {pipeline_mode = #tpu.pipeline_mode<synchronous>, transform_indices = @transform_1, window_bounds = array<i64: 160, 128>}, {pipeline_mode = #tpu.pipeline_mode<synchronous>, transform_indices = @transform_2, window_bounds = array<i64: 1, 128>}, {pipeline_mode = #tpu.pipeline_mode<synchronous>, transform_indices = @transform_3, window_bounds = array<i64: 128, 128>}, {pipeline_mode = #tpu.pipeline_mode<synchronous>, transform_indices = @transform_4, window_bounds = array<i64: 1, 128>}, {pipeline_mode = #tpu.pipeline_mode<synchronous>, transform_indices = @transform_5, window_bounds = array<i64: 1, 128>}, {transform_indices = @transform_6, window_bounds = array<i64: 1, 1>}, {transform_indices = @transform_7, window_bounds = array<i64: 1, 128>}]} {
    %c0 = arith.constant 0 : index
    %c0_0 = arith.constant 0 : index
    %0 = vector.load %arg1[%c0, %c0_0] : memref<128x160xbf16, #tpu.memory_space<vmem>>, vector<128x160xbf16>
    %c0_1 = arith.constant 0 : index
    %c0_2 = arith.constant 0 : index
    %1 = vector.load %arg2[%c0_1, %c0_2] : memref<160x128xbf16, #tpu.memory_space<vmem>>, vector<160x128xbf16>
    %cst = arith.constant dense<0.000000e+00> : vector<128x128xf32>
    %2 = tpu.matmul %0, %1, %cst {dimension_numbers = #tpu.dot_dimension_numbers<[1], [0], [0], [1], [0, 0, 1, 1], [], []>} : vector<128x160xbf16>, vector<160x128xbf16>, vector<128x128xf32> -> vector<128x128xf32>
    %c0_3 = arith.constant 0 : index
    %c0_4 = arith.constant 0 : index
    %3 = vector.load %arg3[%c0_3, %c0_4] : memref<1x128xf32, #tpu.memory_space<vmem>>, vector<1x128xf32>
    %4 = vector.broadcast %3 : vector<1x128xf32> to vector<128x128xf32>
    %5 = arith.addf %2, %4 : vector<128x128xf32>
    %cst_5 = arith.constant 0.000000e+00 : f32
    %6 = vector.broadcast %cst_5 : f32 to vector<128x128xf32>
    %7 = arith.cmpf ogt, %5, %6 : vector<128x128xf32>
    %cst_6 = arith.constant 2.000000e-01 : f32
    %8 = vector.broadcast %cst_6 : f32 to vector<128x128xf32>
    %9 = arith.mulf %8, %5 : vector<128x128xf32>
    %10 = arith.select %7, %5, %9 : vector<128x128xi1>, vector<128x128xf32>
    %11 = arith.truncf %10 : vector<128x128xf32> to vector<128x128xbf16>
    %c0_7 = arith.constant 0 : index
    %c0_8 = arith.constant 0 : index
    %12 = vector.load %arg4[%c0_7, %c0_8] : memref<128x128xbf16, #tpu.memory_space<vmem>>, vector<128x128xbf16>
    %cst_9 = arith.constant dense<0.000000e+00> : vector<128x128xf32>
    %13 = tpu.matmul %11, %12, %cst_9 {dimension_numbers = #tpu.dot_dimension_numbers<[1], [0], [0], [1], [0, 0, 1, 1], [], []>} : vector<128x128xbf16>, vector<128x128xbf16>, vector<128x128xf32> -> vector<128x128xf32>
    %c0_10 = arith.constant 0 : index
    %c0_11 = arith.constant 0 : index
    %14 = vector.load %arg5[%c0_10, %c0_11] : memref<1x128xf32, #tpu.memory_space<vmem>>, vector<1x128xf32>
    %15 = vector.broadcast %14 : vector<1x128xf32> to vector<128x128xf32>
    %16 = arith.addf %13, %15 : vector<128x128xf32>
    %cst_12 = arith.constant 0.000000e+00 : f32
    %17 = vector.broadcast %cst_12 : f32 to vector<128x128xf32>
    %18 = arith.cmpf ogt, %16, %17 : vector<128x128xf32>
    %cst_13 = arith.constant 2.000000e-01 : f32
    %19 = vector.broadcast %cst_13 : f32 to vector<128x128xf32>
    %20 = arith.mulf %19, %16 : vector<128x128xf32>
    %21 = arith.select %18, %16, %20 : vector<128x128xi1>, vector<128x128xf32>
    %c0_14 = arith.constant 0 : index
    %c0_15 = arith.constant 0 : index
    %22 = vector.load %arg6[%c0_14, %c0_15] : memref<1x128xbf16, #tpu.memory_space<vmem>>, vector<1x128xbf16>
    %23 = arith.truncf %21 : vector<128x128xf32> to vector<128x128xbf16>
    %cst_16 = arith.constant dense<0.000000e+00> : vector<1x128xf32>
    %24 = tpu.matmul %22, %23, %cst_16 {dimension_numbers = #tpu.dot_dimension_numbers<[1], [1], [0], [0], [0, 0, 1, 0], [], []>} : vector<1x128xbf16>, vector<128x128xbf16>, vector<1x128xf32> -> vector<1x128xf32>
    %c0_17 = arith.constant 0 : index
    %c0_18 = arith.constant 0 : index
    %25 = memref.load %arg7[%c0_17, %c0_18] : memref<1x1xf32, #tpu.memory_space<smem>>
    %26 = vector.broadcast %25 : f32 to vector<1x128xf32>
    %27 = arith.addf %24, %26 : vector<1x128xf32>
    %c0_19 = arith.constant 0 : index
    %c0_20 = arith.constant 0 : index
    %28 = vector.load %arg8[%c0_19, %c0_20] : memref<1x128xf32, #tpu.memory_space<vmem>>, vector<1x128xf32>
    tpu.vector_store %arg8[%c0_19, %c0_20], %27 {strides = array<i32>} : memref<1x128xf32, #tpu.memory_space<vmem>>, vector<1x128xf32>,
    return
  }
  func.func @transform_0(%arg0: i32) -> (i32, i32) {
    %c0_i32 = arith.constant 0 : i32
    %c0_i32_0 = arith.constant 0 : i32
    return %arg0, %c0_i32 : i32, i32
  }
  func.func @transform_1(%arg0: i32) -> (i32, i32) {
    %c0_i32 = arith.constant 0 : i32
    %c0_i32_0 = arith.constant 0 : i32
    %c0_i32_1 = arith.constant 0 : i32
    return %c0_i32, %c0_i32_0 : i32, i32
  }
  func.func @transform_2(%arg0: i32) -> (i32, i32) {
    %c0_i32 = arith.constant 0 : i32
    %c0_i32_0 = arith.constant 0 : i32
    %c0_i32_1 = arith.constant 0 : i32
    return %c0_i32, %c0_i32_0 : i32, i32
  }
  func.func @transform_3(%arg0: i32) -> (i32, i32) {
    %c0_i32 = arith.constant 0 : i32
    %c0_i32_0 = arith.constant 0 : i32
    %c0_i32_1 = arith.constant 0 : i32
    return %c0_i32, %c0_i32_0 : i32, i32
  }
  func.func @transform_4(%arg0: i32) -> (i32, i32) {
    %c0_i32 = arith.constant 0 : i32
    %c0_i32_0 = arith.constant 0 : i32
    %c0_i32_1 = arith.constant 0 : i32
    return %c0_i32, %c0_i32_0 : i32, i32
  }
  func.func @transform_5(%arg0: i32) -> (i32, i32) {
    %c0_i32 = arith.constant 0 : i32
    %c0_i32_0 = arith.constant 0 : i32
    %c0_i32_1 = arith.constant 0 : i32
    return %c0_i32, %c0_i32_0 : i32, i32
  }
  func.func @transform_6(%arg0: i32) -> (i32, i32) {
    %c0_i32 = arith.constant 0 : i32
    %c0_i32_0 = arith.constant 0 : i32
    %c0_i32_1 = arith.constant 0 : i32
    return %c0_i32, %c0_i32_0 : i32, i32
  }
  func.func @transform_7(%arg0: i32) -> (i32, i32) {
    %c0_i32 = arith.constant 0 : i32
    %c0_i32_0 = arith.constant 0 : i32
    return %c0_i32, %arg0 : i32, i32
  }
}

</mosaic_0001>

<bundles_post_ra>
// kernel: discriminator_forward.1
= control target key start
LH: loop header
LB: loop body
LE: loop exit
PB: predicated region body
PF: predicated region fallthrough
CT: control target
= control target key end

     0   :  { %vm200_vm0 = vcmask 261120   ;;  %s1023_s1 = inlined_call_operand.vmem [shape: bf16[160,128], index: 1, kind: input, shape index: {}]   ;;  %s1024_s0 = inlined_call_operand.vmem [shape: bf16[128,160], index: 0, kind: input, shape index: {}]   ;;  %s1025_s2 = inlined_call_operand.vmem [shape: f32[1,128], index: 2, kind: input, shape index: {}]   ;;  %s1026_s3 = inlined_call_operand.vmem [shape: bf16[128,128], index: 3, kind: input, shape index: {}]   ;;  %s1027_s4 = inlined_call_operand.vmem [shape: f32[1,128], index: 4, kind: input, shape index: {}]   ;;  %s1028_s5 = inlined_call_operand.vmem [shape: bf16[1,128], index: 5, kind: input, shape index: {}]   ;;  %s1029_s6 = inlined_call_operand.<no memory space> [shape: f32[1,1], index: 6, kind: input, shape index: {}]   ;;  %s1030_s7 = inlined_call_operand.vmem [shape: f32[1,128], index: 7, kind: output, shape index: {}]  }
   0x1   :  { %v740_v0 = vld [vmem:[%s1023_s1 + $0x38] sm:$0xff]  ;;  %v742_v1 = vld [vmem:[%s1023_s1 + $0x48] sm:$0xff]  ;;  %v739_v2 = vld [vmem:[%s1023_s1 + $0x30] sm:$0xff] }
   0x2   :  { %225 = vmatpush.bf16.msra.mxu0 %v740_v0  ;;  %280 = vmatpush.bf16.msra.mxu1 %v742_v1  ;;  %v741_v3 = vld [vmem:[%s1023_s1 + $0x40] sm:$0xff]  ;;  %v577_v5 = vld [vmem:[%s1024_s0 + $0x8] sm:$0xf0]  ;;  %v736_v9 = vld [vmem:[%s1023_s1 + $0x18] sm:$0xff] }
   0x3   :  { %v717_v4 = vld [vmem:[%s1024_s0 + $0x4] sm:$0xf]  ;;  %v738_v6 = vld [vmem:[%s1023_s1 + $0x28] sm:$0xff]  ;;  %v735_v10 = vld [vmem:[%s1023_s1 + $0x10] sm:$0xff] }
   0x4   :  { %v580_v7 = vor.u32 %v717_v4, %v577_v5  ;;  %v737_v8 = vld [vmem:[%s1023_s1 + $0x20] sm:$0xff]  ;;  %v719_v11 = vld [vmem:[%s1024_s0 + $0x14] sm:$0xf]  ;;  %v585_v12 = vld [vmem:[%s1024_s0 + $0x18] sm:$0xf0] }
   0x5   :  { %v734_v13 = vld [vmem:[%s1023_s1 + $0x8] sm:$0xff]  ;;  %v588_v14 = vor.u32 %v719_v11, %v585_v12  ;;  %v733_v15 = vld [vmem:[%s1023_s1] sm:$0xff]  ;;  %v583_v22 = vld [vmem:[%s1024_s0 + $0x10] sm:$0xf] }
   0x6   :  { %226 = vmatpush.bf16.msra.mxu0 %v739_v2  ;;  %281 = vmatpush.bf16.msra.mxu1 %v741_v3  ;;  %v575_v16 = vld [vmem:[%s1024_s0] sm:$0xf]  ;;  %v718_v17 = vld [vmem:[%s1024_s0 + $0x4] sm:$0xf0]  ;;  %v721_v19 = vld [vmem:[%s1024_s0 + $0x24] sm:$0xf] }
   0x7   :  { %v576_v18 = vor.u32 %v718_v17, %v575_v16  ;;  %v593_v20 = vld [vmem:[%s1024_s0 + $0x28] sm:$0xf0]  ;;  %v720_v23 = vld [vmem:[%s1024_s0 + $0x14] sm:$0xf0]  ;;  %v723_v25 = vld [vmem:[%s1024_s0 + $0x34] sm:$0xf] }
   0x8   :  { %v596_v21 = vor.u32 %v721_v19, %v593_v20  ;;  %v584_v24 = vor.u32 %v720_v23, %v583_v22  ;;  %v601_v26 = vld [vmem:[%s1024_s0 + $0x38] sm:$0xf0]  ;;  %v591_v28 = vld [vmem:[%s1024_s0 + $0x20] sm:$0xf]  ;;  %v722_v29 = vld [vmem:[%s1024_s0 + $0x24] sm:$0xf0] }
   0x9   :  { %677 = vmatmul.msk.bf16.vlgmr.msra.gmra.mxu1 %vm200_vm0, %v580_v7  ;;  %v604_v27 = vor.u32 %v723_v25, %v601_v26  ;;  %v592_v30 = vor.u32 %v722_v29, %v591_v28  ;;  %v725_v31 = vld [vmem:[%s1024_s0 + $0x44] sm:$0xf]  ;;  %v609_v32 = vld [vmem:[%s1024_s0 + $0x48] sm:$0xf0]  ;;  %v599_v34 = vld [vmem:[%s1024_s0 + $0x30] sm:$0xf] }
   0xa   :  { %227 = vmatpush.bf16.msra.mxu0 %v738_v6  ;;  %v612_v33 = vor.u32 %v725_v31, %v609_v32  ;;  %v724_v35 = vld [vmem:[%s1024_s0 + $0x34] sm:$0xf0]  ;;  %v727_v37 = vld [vmem:[%s1024_s0 + $0x54] sm:$0xf]  ;;  %v617_v38 = vld [vmem:[%s1024_s0 + $0x58] sm:$0xf0] }
   0xb   :  { %v600_v36 = vor.u32 %v724_v35, %v599_v34  ;;  %v620_v39 = vor.u32 %v727_v37, %v617_v38  ;;  %v607_v40 = vld [vmem:[%s1024_s0 + $0x40] sm:$0xf]  ;;  %v726_v41 = vld [vmem:[%s1024_s0 + $0x44] sm:$0xf0]  ;;  %v729_v43 = vld [vmem:[%s1024_s0 + $0x64] sm:$0xf] }
   0xc   :  { %v608_v42 = vor.u32 %v726_v41, %v607_v40  ;;  %v625_v44 = vld [vmem:[%s1024_s0 + $0x68] sm:$0xf0]  ;;  %v615_v46 = vld [vmem:[%s1024_s0 + $0x50] sm:$0xf]  ;;  %v728_v47 = vld [vmem:[%s1024_s0 + $0x54] sm:$0xf0] }
   0xd   :  { %v628_v45 = vor.u32 %v729_v43, %v625_v44  ;;  %v616_v48 = vor.u32 %v728_v47, %v615_v46  ;;  %v750_v49 = vld [vmem:[%s1026_s3 + $0x38] sm:$0xff]  ;;  %v749_v50 = vld [vmem:[%s1026_s3 + $0x30] sm:$0xff]  ;;  %v748_v53 = vld [vmem:[%s1026_s3 + $0x28] sm:$0xff] }
   0xe   :  { %228 = vmatpush.bf16.msra.mxu0 %v737_v8  ;;  %447 = vmatpush.bf16.msra.mxu2 %v750_v49  ;;  %v731_v51 = vld [vmem:[%s1024_s0 + $0x74] sm:$0xf]  ;;  %v633_v52 = vld [vmem:[%s1024_s0 + $0x78] sm:$0xf0]  ;;  %v747_v55 = vld [vmem:[%s1026_s3 + $0x20] sm:$0xff] }
   0xf   :  { %v636_v54 = vor.u32 %v731_v51, %v633_v52  ;;  %v623_v56 = vld [vmem:[%s1024_s0 + $0x60] sm:$0xf]  ;;  %v730_v57 = vld [vmem:[%s1024_s0 + $0x64] sm:$0xf0]  ;;  %v746_v59 = vld [vmem:[%s1026_s3 + $0x18] sm:$0xff] }
  0x10   :  { %v624_v58 = vor.u32 %v730_v57, %v623_v56  ;;  %v745_v60 = vld [vmem:[%s1026_s3 + $0x10] sm:$0xff]  ;;  %v744_v62 = vld [vmem:[%s1026_s3 + $0x8] sm:$0xff]  ;;  %v743_v63 = vld [vmem:[%s1026_s3] sm:$0xff] }
  0x11   :  { %v631_v0 = vld [vmem:[%s1024_s0 + $0x70] sm:$0xf]  ;;  %v732_v1 = vld [vmem:[%s1024_s0 + $0x74] sm:$0xf0]  ;;  %v954_v5 = vld [vmem:[%s1025_s2] ss:$0 sm:$0xff] }
  0x12   :  { %229 = vmatpush.bf16.msra.mxu0 %v736_v9  ;;  %448 = vmatpush.bf16.msra.mxu2 %v749_v50  ;;  %v632_v2 = vor.u32 %v732_v1, %v631_v0 }
  0x16   :  { %230 = vmatpush.bf16.msra.mxu0 %v735_v10  ;;  %449 = vmatpush.bf16.msra.mxu2 %v748_v53 }
  0x19   :  { %678 = vmatmul.msk.bf16.gmra.mxu1 %vm200_vm0, %v588_v14 }
  0x1a   :  { %231 = vmatpush.bf16.msra.mxu0 %v734_v13  ;;  %450 = vmatpush.bf16.msra.mxu2 %v747_v55 }
  0x1e   :  { %232 = vmatpush.bf16.msra.mxu0 %v733_v15  ;;  %451 = vmatpush.bf16.msra.mxu2 %v746_v59 }
  0x21   :  { %233 = vmatmul.bf16.vlgmr.msra.gmra.mxu0 %v576_v18 }
  0x22   :  { %452 = vmatpush.bf16.msra.mxu2 %v745_v60 }
  0x26   :  { %453 = vmatpush.bf16.msra.mxu2 %v744_v62 }
  0x29   :  { %679 = vmatmul.msk.bf16.gmra.mxu1 %vm200_vm0, %v596_v21 }
  0x2a   :  { %454 = vmatpush.bf16.msra.mxu2 %v743_v63 }
  0x31   :  { %238 = vmatmul.bf16.gmra.mxu0 %v584_v24 }
  0x39   :  { %680 = vmatmul.msk.bf16.gmra.mxu1 %vm200_vm0, %v604_v27 }
  0x41   :  { %243 = vmatmul.bf16.gmra.mxu0 %v592_v30 }
  0x49   :  { %681 = vmatmul.msk.bf16.gmra.mxu1 %vm200_vm0, %v612_v33 }
  0x51   :  { %248 = vmatmul.bf16.gmra.mxu0 %v600_v36 }
  0x59   :  { %682 = vmatmul.msk.bf16.gmra.mxu1 %vm200_vm0, %v620_v39 }
  0x61   :  { %253 = vmatmul.bf16.gmra.mxu0 %v608_v42 }
  0x69   :  { %683 = vmatmul.msk.bf16.gmra.mxu1 %vm200_vm0, %v628_v45 }
  0x71   :  { %258 = vmatmul.bf16.gmra.mxu0 %v616_v48 }
  0x79   :  { %684 = vmatmul.msk.bf16.gmra.mxu1 %vm200_vm0, %v636_v54 }
  0x81   :  { %263 = vmatmul.bf16.gmra.mxu0 %v624_v58 }
  0x86   :  { %v283_v61 = vpop.f32.mrf.mxu1 }
  0x8e   :  { %v285_v3 = vpop.f32.mrf.mxu1 }
  0x91   :  { %268 = vmatmul.bf16.gmra.mxu0 %v632_v2 }
  0x96   :  { %v288_v4 = vpop.f32.mrf.mxu1 }
  0x9e   :  { %v234_v6 = vpop.f32.mrf.mxu0  ;;  %v290_v7 = vpop.f32.mrf.mxu1 }
  0x9f   :  { %v235_v8 = vadd.f32 %v954_v5, %v234_v6 }
  0xa1   :  { %v284_v9 = vadd.f32 %v283_v61, %v235_v8 }
  0xa3   :  { %v339_v13 = vmul.f32 0.2, %v284_v9  ;;  %vm323_vm1 = vcmp.gt.f32.partialorder %v284_v9, 0.0 }
  0xa5   :  { %v355_v16 = vsel %vm323_vm1, %v284_v9, %v339_v13 }
  0xa6   :  { %v236_v10 = vpop.f32.mrf.mxu0  ;;  %v293_v14 = vpop.f32.mrf.mxu1 }
  0xa7   :  { %v237_v11 = vadd.f32 %v954_v5, %v236_v10 }
  0xa9   :  { %v286_v12 = vadd.f32 %v285_v3, %v237_v11 }
  0xab   :  { %vm324_vm2 = vcmp.gt.f32.partialorder %v286_v12, 0.0  ;;  %v340_v15 = vmul.f32 0.2, %v286_v12 }
  0xad   :  { %v356_v17 = vsel %vm324_vm2, %v286_v12, %v340_v15 }
  0xae   :  { %v239_v18 = vpop.f32.mrf.mxu0  ;;  %v371_v19 = vpack.c.bf16 %v356_v17, %v355_v16  ;;  %v295_v21 = vpop.f32.mrf.mxu1 }
  0xaf   :  { %v240_v20 = vadd.f32 %v954_v5, %v239_v18 }
  0xb0   :  { %455 = vmatmul.bf16.vlgmr.msra.gmra.mxu2 %v371_v19 }
  0xb1   :  { %v289_v22 = vadd.f32 %v288_v4, %v240_v20 }
  0xb3   :  { %v341_v26 = vmul.f32 0.2, %v289_v22  ;;  %vm325_vm3 = vcmp.gt.f32.partialorder %v289_v22, 0.0 }
  0xb5   :  { %v357_v28 = vsel %vm325_vm3, %v289_v22, %v341_v26 }
  0xb6   :  { %v241_v23 = vpop.f32.mrf.mxu0  ;;  %v298_v32 = vpop.f32.mrf.mxu1 }
  0xb7   :  { %v242_v24 = vadd.f32 %v954_v5, %v241_v23 }
  0xb9   :  { %v291_v25 = vadd.f32 %v290_v7, %v242_v24 }
  0xbb   :  { %vm326_vm4 = vcmp.gt.f32.partialorder %v291_v25, 0.0  ;;  %v342_v27 = vmul.f32 0.2, %v291_v25 }
  0xbd   :  { %v358_v29 = vsel %vm326_vm4, %v291_v25, %v342_v27 }
  0xbe   :  { %v244_v30 = vpop.f32.mrf.mxu0  ;;  %v372_v31 = vpack.c.bf16 %v358_v29, %v357_v28  ;;  %v300_v37 = vpop.f32.mrf.mxu1 }
  0xbf   :  { %v245_v33 = vadd.f32 %v954_v5, %v244_v30 }
  0xc0   :  { %460 = vmatmul.bf16.gmra.mxu2 %v372_v31 }
  0xc1   :  { %v294_v34 = vadd.f32 %v293_v14, %v245_v33 }
  0xc3   :  { %v343_v39 = vmul.f32 0.2, %v294_v34  ;;  %vm327_vm5 = vcmp.gt.f32.partialorder %v294_v34, 0.0 }
  0xc5   :  { %v359_v41 = vsel %vm327_vm5, %v294_v34, %v343_v39 }
  0xc6   :  { %v246_v35 = vpop.f32.mrf.mxu0  ;;  %v303_v46 = vpop.f32.mrf.mxu1 }
  0xc7   :  { %v247_v36 = vadd.f32 %v954_v5, %v246_v35 }
  0xc9   :  { %v296_v38 = vadd.f32 %v295_v21, %v247_v36 }
  0xcb   :  { %vm328_vm6 = vcmp.gt.f32.partialorder %v296_v38, 0.0  ;;  %v344_v40 = vmul.f32 0.2, %v296_v38 }
  0xcd   :  { %v360_v42 = vsel %vm328_vm6, %v296_v38, %v344_v40 }
  0xce   :  { %v249_v43 = vpop.f32.mrf.mxu0  ;;  %v373_v44 = vpack.c.bf16 %v360_v42, %v359_v41  ;;  %v305_v53 = vpop.f32.mrf.mxu1 }
  0xcf   :  { %v250_v45 = vadd.f32 %v954_v5, %v249_v43 }
  0xd0   :  { %465 = vmatmul.bf16.gmra.mxu2 %v373_v44 }
  0xd1   :  { %v299_v47 = vadd.f32 %v298_v32, %v250_v45  ;;  %v975_v45 = vld [vmem:[%s1027_s4] ss:$0 sm:$0xff] }
  0xd3   :  { %v345_v51 = vmul.f32 0.2, %v299_v47  ;;  %vm329_vm7 = vcmp.gt.f32.partialorder %v299_v47, 0.0 }
  0xd5   :  { %v361_v54 = vsel %vm329_vm7, %v299_v47, %v345_v51 }
  0xd6   :  { %v251_v48 = vpop.f32.mrf.mxu0  ;;  %v308_v61 = vpop.f32.mrf.mxu1 }
  0xd7   :  { %v252_v49 = vadd.f32 %v954_v5, %v251_v48 }
  0xd9   :  { %v301_v50 = vadd.f32 %v300_v37, %v252_v49 }
  0xdb   :  { %vm330_vm8 = vcmp.gt.f32.partialorder %v301_v50, 0.0  ;;  %v346_v52 = vmul.f32 0.2, %v301_v50 }
  0xdd   :  { %v362_v55 = vsel %vm330_vm8, %v301_v50, %v346_v52 }
  0xde   :  { %v254_v56 = vpop.f32.mrf.mxu0  ;;  %v374_v57 = vpack.c.bf16 %v362_v55, %v361_v54  ;;  %v310_v7 = vpop.f32.mrf.mxu1 }
  0xdf   :  { %v255_v58 = vadd.f32 %v954_v5, %v254_v56 }
  0xe0   :  { %470 = vmatmul.bf16.gmra.mxu2 %v374_v57 }
  0xe1   :  { %v304_v59 = vadd.f32 %v303_v46, %v255_v58 }
  0xe3   :  { %v347_v0 = vmul.f32 0.2, %v304_v59  ;;  %vm331_vm9 = vcmp.gt.f32.partialorder %v304_v59, 0.0 }
  0xe5   :  { %v363_v2 = vsel %vm331_vm9, %v304_v59, %v347_v0 }
  0xe6   :  { %v256_v60 = vpop.f32.mrf.mxu0  ;;  %v313_v14 = vpop.f32.mrf.mxu1 }
  0xe7   :  { %v257_v62 = vadd.f32 %v954_v5, %v256_v60 }
  0xe9   :  { %v306_v63 = vadd.f32 %v305_v53, %v257_v62 }
  0xeb   :  { %vm332_vm10 = vcmp.gt.f32.partialorder %v306_v63, 0.0  ;;  %v348_v1 = vmul.f32 0.2, %v306_v63 }
  0xed   :  { %v364_v3 = vsel %vm332_vm10, %v306_v63, %v348_v1 }
  0xee   :  { %v259_v4 = vpop.f32.mrf.mxu0  ;;  %v375_v6 = vpack.c.bf16 %v364_v3, %v363_v2  ;;  %v315_v21 = vpop.f32.mrf.mxu1 }
  0xef   :  { %v260_v8 = vadd.f32 %v954_v5, %v259_v4 }
  0xf0   :  { %475 = vmatmul.bf16.gmra.mxu2 %v375_v6 }
  0xf1   :  { %v309_v9 = vadd.f32 %v308_v61, %v260_v8 }
  0xf3   :  { %v349_v13 = vmul.f32 0.2, %v309_v9  ;;  %vm333_vm11 = vcmp.gt.f32.partialorder %v309_v9, 0.0 }
  0xf5   :  { %v365_v16 = vsel %vm333_vm11, %v309_v9, %v349_v13 }
  0xf6   :  { %v261_v10 = vpop.f32.mrf.mxu0  ;;  %v318_v30 = vpop.f32.mrf.mxu1 }
  0xf7   :  { %v262_v11 = vadd.f32 %v954_v5, %v261_v10 }
  0xf9   :  { %v311_v12 = vadd.f32 %v310_v7, %v262_v11 }
  0xfb   :  { %vm334_vm12 = vcmp.gt.f32.partialorder %v311_v12, 0.0  ;;  %v350_v15 = vmul.f32 0.2, %v311_v12 }
  0xfd   :  { %v366_v17 = vsel %vm334_vm12, %v311_v12, %v350_v15 }
  0xfe   :  { %v264_v18 = vpop.f32.mrf.mxu0  ;;  %v376_v19 = vpack.c.bf16 %v366_v17, %v365_v16  ;;  %v320_v37 = vpop.f32.mrf.mxu1 }
  0xff   :  { %v265_v20 = vadd.f32 %v954_v5, %v264_v18 }
 0x100   :  { %480 = vmatmul.bf16.gmra.mxu2 %v376_v19 }
 0x101   :  { %v314_v22 = vadd.f32 %v313_v14, %v265_v20 }
 0x103   :  { %v351_v26 = vmul.f32 0.2, %v314_v22  ;;  %vm335_vm13 = vcmp.gt.f32.partialorder %v314_v22, 0.0 }
 0x105   :  { %v367_v28 = vsel %vm335_vm13, %v314_v22, %v351_v26 }
 0x106   :  { %v266_v23 = vpop.f32.mrf.mxu0 }
 0x107   :  { %v267_v24 = vadd.f32 %v954_v5, %v266_v23 }
 0x109   :  { %v316_v25 = vadd.f32 %v315_v21, %v267_v24 }
 0x10b   :  { %vm336_vm14 = vcmp.gt.f32.partialorder %v316_v25, 0.0  ;;  %v352_v27 = vmul.f32 0.2, %v316_v25 }
 0x10d   :  { %v368_v29 = vsel %vm336_vm14, %v316_v25, %v352_v27 }
 0x10e   :  { %v269_v31 = vpop.f32.mrf.mxu0  ;;  %v377_v32 = vpack.c.bf16 %v368_v29, %v367_v28 }
 0x10f   :  { %v270_v33 = vadd.f32 %v954_v5, %v269_v31 }
 0x110   :  { %485 = vmatmul.bf16.gmra.mxu2 %v377_v32 }
 0x111   :  { %v319_v34 = vadd.f32 %v318_v30, %v270_v33 }
 0x113   :  { %v353_v39 = vmul.f32 0.2, %v319_v34  ;;  %vm337_vm15 = vcmp.gt.f32.partialorder %v319_v34, 0.0 }
 0x115   :  { %v369_v41 = vsel %vm337_vm15, %v319_v34, %v353_v39 }
 0x116   :  { %v271_v35 = vpop.f32.mrf.mxu0 }
 0x117   :  { %v272_v36 = vadd.f32 %v954_v5, %v271_v35 }
 0x119   :  { %v321_v38 = vadd.f32 %v320_v37, %v272_v36 }
 0x11b   :  { %vm338_vm0 = vcmp.gt.f32.partialorder %v321_v38, 0.0  ;;  %v354_v40 = vmul.f32 0.2, %v321_v38 }
 0x11d   :  { %v370_v42 = vsel %vm338_vm0, %v321_v38, %v354_v40 }
 0x11e   :  { %v378_v43 = vpack.c.bf16 %v370_v42, %v369_v41 }
 0x120   :  { %490 = vmatmul.bf16.gmra.mxu2 %v378_v43 }
 0x133   :  { %v456_v44 = vpop.f32.mrf.mxu2 }
 0x134   :  { %v457_v46 = vadd.f32 %v975_v45, %v456_v44 }
 0x136   :  { %v512_v5 = vmul.f32 0.2, %v457_v46  ;;  %vm496_vm1 = vcmp.gt.f32.partialorder %v457_v46, 0.0 }
 0x138   :  { %v979_v50 = vsel %vm496_vm1, %v457_v46, %v512_v5 }
 0x13b   :  { %v458_v47 = vpop.f32.mrf.mxu2 }
 0x13c   :  { %v459_v48 = vadd.f32 %v975_v45, %v458_v47 }
 0x13e   :  { %v513_v49 = vmul.f32 0.2, %v459_v48  ;;  %vm497_vm2 = vcmp.gt.f32.partialorder %v459_v48, 0.0 }
 0x140   :  { %v981_v51 = vsel %vm497_vm2, %v459_v48, %v513_v49 }
 0x141   :  { %v545_v52 = vpack.c.bf16 %v981_v51, %v979_v50 }
 0x143   :  { %v461_v53 = vpop.f32.mrf.mxu2 }
 0x144   :  { %v462_v54 = vadd.f32 %v975_v45, %v461_v53 }
 0x146   :  { %v514_v56 = vmul.f32 0.2, %v462_v54  ;;  %vm498_vm3 = vcmp.gt.f32.partialorder %v462_v54, 0.0 }
 0x148   :  { %v987_v59 = vsel %vm498_vm3, %v462_v54, %v514_v56  ;;  %v554_v56 = vstv %s1029_s6 }
 0x14b   :  { %v463_v55 = vpop.f32.mrf.mxu2 }
 0x14c   :  { %v464_v57 = vadd.f32 %v975_v45, %v463_v55 }
 0x14e   :  { %v515_v58 = vmul.f32 0.2, %v464_v57  ;;  %vm499_vm4 = vcmp.gt.f32.partialorder %v464_v57, 0.0 }
 0x150   :  { %v989_v60 = vsel %vm499_vm4, %v464_v57, %v515_v58 }
 0x151   :  { %v546_v61 = vpack.c.bf16 %v989_v60, %v987_v59 }
 0x153   :  { %v466_v62 = vpop.f32.mrf.mxu2 }
 0x154   :  { %v467_v63 = vadd.f32 %v975_v45, %v466_v62 }
 0x156   :  { %v516_v1 = vmul.f32 0.2, %v467_v63  ;;  %vm500_vm5 = vcmp.gt.f32.partialorder %v467_v63, 0.0 }
 0x158   :  { %v995_v4 = vsel %vm500_vm5, %v467_v63, %v516_v1 }
 0x15b   :  { %v468_v0 = vpop.f32.mrf.mxu2 }
 0x15c   :  { %v469_v2 = vadd.f32 %v975_v45, %v468_v0 }
 0x15e   :  { %v517_v3 = vmul.f32 0.2, %v469_v2  ;;  %vm501_vm6 = vcmp.gt.f32.partialorder %v469_v2, 0.0 }
 0x160   :  { %v533_v6 = vsel %vm501_vm6, %v469_v2, %v517_v3 }
 0x161   :  { %v547_v7 = vpack.c.bf16 %v533_v6, %v995_v4 }
 0x163   :  { %v471_v8 = vpop.f32.mrf.mxu2 }
 0x164   :  { %v472_v9 = vadd.f32 %v975_v45, %v471_v8 }
 0x166   :  { %v518_v11 = vmul.f32 0.2, %v472_v9  ;;  %vm502_vm7 = vcmp.gt.f32.partialorder %v472_v9, 0.0 }
 0x168   :  { %v534_v14 = vsel %vm502_vm7, %v472_v9, %v518_v11 }
 0x16b   :  { %v473_v10 = vpop.f32.mrf.mxu2 }
 0x16c   :  { %v474_v12 = vadd.f32 %v975_v45, %v473_v10 }
 0x16e   :  { %v519_v13 = vmul.f32 0.2, %v474_v12  ;;  %vm503_vm8 = vcmp.gt.f32.partialorder %v474_v12, 0.0 }
 0x170   :  { %v535_v15 = vsel %vm503_vm8, %v474_v12, %v519_v13 }
 0x171   :  { %v548_v16 = vpack.c.bf16 %v535_v15, %v534_v14 }
 0x173   :  { %v476_v17 = vpop.f32.mrf.mxu2 }
 0x174   :  { %v477_v18 = vadd.f32 %v975_v45, %v476_v17 }
 0x176   :  { %v520_v20 = vmul.f32 0.2, %v477_v18  ;;  %vm504_vm9 = vcmp.gt.f32.partialorder %v477_v18, 0.0 }
 0x178   :  { %v536_v23 = vsel %vm504_vm9, %v477_v18, %v520_v20 }
 0x17b   :  { %v478_v19 = vpop.f32.mrf.mxu2 }
 0x17c   :  { %v479_v21 = vadd.f32 %v975_v45, %v478_v19 }
 0x17e   :  { %v521_v22 = vmul.f32 0.2, %v479_v21  ;;  %vm505_vm10 = vcmp.gt.f32.partialorder %v479_v21, 0.0 }
 0x180   :  { %v537_v24 = vsel %vm505_vm10, %v479_v21, %v521_v22 }
 0x181   :  { %v549_v25 = vpack.c.bf16 %v537_v24, %v536_v23 }
 0x183   :  { %v481_v26 = vpop.f32.mrf.mxu2 }
 0x184   :  { %v482_v46 = vadd.f32 %v975_v45, %v481_v26 }
 0x186   :  { %v522_v49 = vmul.f32 0.2, %v482_v46  ;;  %vm506_vm0 = vcmp.gt.f32.partialorder %v482_v46, 0.0 }
 0x188   :  { %v538_v54 = vsel %vm506_vm0, %v482_v46, %v522_v49 }
 0x18b   :  { %v483_v27 = vpop.f32.mrf.mxu2 }
 0x18c   :  { %v484_v43 = vadd.f32 %v975_v45, %v483_v27 }
 0x18e   :  { %v523_v48 = vmul.f32 0.2, %v484_v43  ;;  %vm507_vm15 = vcmp.gt.f32.partialorder %v484_v43, 0.0 }
 0x190   :  { %v539_v53 = vsel %vm507_vm15, %v484_v43, %v523_v48 }
 0x191   :  { %v550_v55 = vpack.c.bf16 %v539_v53, %v538_v54 }
 0x193   :  { %v486_v28 = vpop.f32.mrf.mxu2 }
 0x194   :  { %v487_v37 = vadd.f32 %v975_v45, %v486_v28 }
 0x196   :  { %v524_v42 = vmul.f32 0.2, %v487_v37  ;;  %vm508_vm14 = vcmp.gt.f32.partialorder %v487_v37, 0.0 }
 0x198   :  { %v540_v47 = vsel %vm508_vm14, %v487_v37, %v524_v42 }
 0x19b   :  { %v488_v29 = vpop.f32.mrf.mxu2 }
 0x19c   :  { %v489_v35 = vadd.f32 %v975_v45, %v488_v29 }
 0x19e   :  { %v525_v41 = vmul.f32 0.2, %v489_v35  ;;  %vm509_vm13 = vcmp.gt.f32.partialorder %v489_v35, 0.0 }
 0x1a0   :  { %v541_v44 = vsel %vm509_vm13, %v489_v35, %v525_v41 }
 0x1a1   :  { %v551_v5 = vpack.c.bf16 %v541_v44, %v540_v47 }
 0x1a3   :  { %v491_v30 = vpop.f32.mrf.mxu2 }
 0x1a4   :  { %v492_v31 = vadd.f32 %v975_v45, %v491_v30 }
 0x1a6   :  { %v526_v33 = vmul.f32 0.2, %v492_v31  ;;  %vm510_vm11 = vcmp.gt.f32.partialorder %v492_v31, 0.0 }
 0x1a8   :  { %v542_v38 = vsel %vm510_vm11, %v492_v31, %v526_v33 }
 0x1ab   :  { %v493_v32 = vpop.f32.mrf.mxu2 }
 0x1ac   :  { %v494_v34 = vadd.f32 %v975_v45, %v493_v32  ;;  %v544_v45 = vld [vmem:[%s1028_s5] sm:$0x1] }
 0x1ae   :  { %v527_v36 = vmul.f32 0.2, %v494_v34  ;;  %vm511_vm12 = vcmp.gt.f32.partialorder %v494_v34, 0.0 }
 0x1b0   :  { %v543_v39 = vsel %vm511_vm12, %v494_v34, %v527_v36 }
 0x1b1   :  { %v552_v40 = vpack.c.bf16 %v543_v39, %v542_v38 }
 0x1b3   :  { %555 = vmatpush.bf16.xpose.msra.mxu3 %v552_v40 }
 0x1bb   :  { %556 = vmatpush.bf16.xpose.msra.mxu3 %v551_v5 }
 0x1c3   :  { %557 = vmatpush.bf16.xpose.msra.mxu3 %v550_v55 }
 0x1cb   :  { %558 = vmatpush.bf16.xpose.msra.mxu3 %v549_v25 }
 0x1d3   :  { %559 = vmatpush.bf16.xpose.msra.mxu3 %v548_v16 }
 0x1db   :  { %560 = vmatpush.bf16.xpose.msra.mxu3 %v547_v7 }
 0x1e3   :  { %561 = vmatpush.bf16.xpose.msra.mxu3 %v546_v61 }
 0x1eb   :  { %562 = vmatpush.bf16.xpose.msra.mxu3 %v545_v52 }
 0x1f2   :  { %563 = vmatmul.bf16.vlgmr.msra.gmra.mxu3 %v544_v45 }
 0x275   :  { %v564_v57 = vpop.f32.mrf.mxu3 }
 0x276   :  { %v565_v58 = vadd.f32 %v564_v57, %v554_v56 }
 0x278   :  { %568 = vst [vmem:[%s1030_s7] sm:$0x1] %v565_v58 }
 0x27d   :  { %v566_v59 = vpop.f32.mrf.mxu3 }

</bundles_post_ra>
